<compile_context>
chip_gen: v7x
topology: tpu7x:2x2x1
jax: 0.10.0
libtpu: 0.0.40
codegen_flags: <defaults>
</compile_context>

<pallas_src>
import functools
import math

import jax
import jax.numpy as jnp
from jax.experimental import pallas as pl
from jax.experimental.pallas import tpu as pltpu


def _diverse_loss_kernel(x_ref, o_ref, acc_ref, *, inv_count):
    a = pl.program_id(0)
    b = pl.program_id(1)
    is_first = jnp.logical_and(a == 0, b == 0)
    is_last = jnp.logical_and(a == pl.num_programs(0) - 1,
                              b == pl.num_programs(1) - 1)

    @pl.when(is_first)
    def _():
        acc_ref[...] = jnp.zeros_like(acc_ref)

    # (K, TB) tile in native dtype; accumulate raw column sums in f32.
    x = x_ref[0].astype(jnp.float32)                     # (K, TB)
    acc_ref[...] += jnp.sum(x, axis=1, keepdims=True)    # (K, 1)

    @pl.when(is_last)
    def _():
        m = acc_ref[...] * inv_count            # means over all non-`dim` axes
        mx = jnp.max(m, axis=0, keepdims=True)  # stable softmax
        sh = m - mx
        e = jnp.exp(sh)
        s = jnp.sum(e, axis=0, keepdims=True)   # (1, 1)
        # 1/s on the EUP; one Newton step restores ~f32 accuracy.
        inv_s = pl.reciprocal(s, approx=True)
        inv_s = inv_s * (2.0 - s * inv_s)
        p = e * inv_s                           # softmax(m)
        logp = sh - jnp.log(s)                  # log_softmax(m)
        o_ref[0, 0] = jnp.sum(p * logp)


def diverse_loss(x, dim):
    """Pallas equivalent of _Diverse_Loss()(x, dim). Returns a float32 scalar."""
    ndim = x.ndim
    dim = dim % ndim
    shape = x.shape
    K = int(shape[dim])
    A = int(math.prod(shape[:dim])) if dim > 0 else 1
    B = int(math.prod(shape[dim + 1:])) if dim < ndim - 1 else 1

    # Pure reshape (no transpose, no upcast): view as (A, K, B) in native dtype.
    x3 = x.reshape(A, K, B)

    # Tile the B axis: ~2 MiB per block, lane-aligned (multiple of 128).
    itemsize = jnp.dtype(x.dtype).itemsize
    target_bytes = 2 * 1024 * 1024
    tb = max(128, (target_bytes // max(K * itemsize, 1)) // 128 * 128)
    b_lane = -(-B // 128) * 128          # B rounded up to a lane multiple
    tb = min(tb, b_lane)
    Bp = -(-B // tb) * tb                # pad so tb divides the column count
    if Bp != B:
        # Zero padding keeps the raw sum exact; we divide by the true count.
        x3 = jnp.pad(x3, ((0, 0), (0, 0), (0, Bp - B)))

    inv_count = 1.0 / float(A * B)       # true number of averaged elements
    grid = (A, Bp // tb)

    kernel = functools.partial(_diverse_loss_kernel, inv_count=inv_count)
    out = pl.pallas_call(
        kernel,
        out_shape=jax.ShapeDtypeStruct((1, 1), jnp.float32),
        grid_spec=pltpu.PrefetchScalarGridSpec(
            num_scalar_prefetch=0,
            grid=grid,
            in_specs=[pl.BlockSpec((1, K, tb), lambda a, b: (a, 0, b))],
            out_specs=pl.BlockSpec(memory_space=pltpu.SMEM),
            scratch_shapes=[pltpu.VMEM((K, 1), jnp.float32)],
        ),
        compiler_params=pltpu.CompilerParams(
            dimension_semantics=("arbitrary", "arbitrary")),
    )(x3)
    return out[0, 0]


def _diverse_loss_ref(x, dim):
    # Pure-JAX reference mirroring the PyTorch forward.
    m = x.astype(jnp.float32)
    for i in range(x.ndim):
        if i != dim:
            m = jnp.mean(m, axis=i, keepdims=True)
    v = jnp.squeeze(m)
    sm = jax.nn.softmax(v, axis=0)
    lsm = jax.nn.log_softmax(v, axis=0)
    return jnp.sum(sm * lsm)


if __name__ == "__main__":
    key = jax.random.PRNGKey(0)
    # Small NCHW-like input: batch=2, channels=4, spatial=16x16.
    x = jax.random.normal(key, (2, 4, 16, 16), dtype=jnp.float32)

    # Primary check: reduce onto dim=1 (channel axis).
    out = jax.block_until_ready(diverse_loss(x, 1))
    ref = jax.block_until_ready(_diverse_loss_ref(x, 1))
    assert jnp.allclose(out, ref, atol=1e-5, rtol=1e-5), (out, ref)

    # Secondary check: dim = last axis (exercises the zero-padding path).
    out3 = jax.block_until_ready(diverse_loss(x, 3))
    ref3 = jax.block_until_ready(_diverse_loss_ref(x, 3))
    assert jnp.allclose(out3, ref3, atol=1e-5, rtol=1e-5), (out3, ref3)

    print("KERNEL_OK")
</pallas_src>

<mosaic_0001>
module attributes {stable_mosaic.version = 11 : i64} {
  func.func @_diverse_loss_kernel(%arg0: i32, %arg1: i32, %arg2: memref<1x4x256xf32, #tpu.memory_space<vmem>>, %arg3: memref<1x1xf32, #tpu.memory_space<smem>>, %arg4: memref<4x1xf32, #tpu.memory_space<vmem>>) attributes {dimension_semantics = [#tpu.dimension_semantics<arbitrary>, #tpu.dimension_semantics<arbitrary>], iteration_bounds = array<i64: 2, 1>, scalar_prefetch = 0 : i64, scratch_operands = 1 : i64, tpu.core_type = #tpu.core_type<tc>, window_params = [{transform_indices = @transform_0, window_bounds = array<i64: 1, 4, 256>}, {transform_indices = @transform_1, window_bounds = array<i64: 1, 1>}]} {
    %c0_i32 = arith.constant 0 : i32
    %0 = arith.cmpi eq, %arg0, %c0_i32 : i32
    %c0_i32_0 = arith.constant 0 : i32
    %1 = arith.cmpi eq, %arg1, %c0_i32_0 : i32
    %2 = arith.andi %0, %1 : i1
    %c1_i32 = arith.constant 1 : i32
    %3 = arith.cmpi eq, %arg0, %c1_i32 : i32
    %c0_i32_1 = arith.constant 0 : i32
    %4 = arith.cmpi eq, %arg1, %c0_i32_1 : i32
    %5 = arith.andi %3, %4 : i1
    %6 = arith.extui %2 : i1 to i32
    %c0_i32_2 = arith.constant 0 : i32
    %7 = arith.cmpi ne, %6, %c0_i32_2 : i32
    scf.if %7 {
      %cst_10 = arith.constant 0.000000e+00 : f32
      %17 = vector.broadcast %cst_10 : f32 to vector<4x1xf32>
      %c0_11 = arith.constant 0 : index
      %c0_12 = arith.constant 0 : index
      %18 = vector.load %arg4[%c0_11, %c0_12] : memref<4x1xf32, #tpu.memory_space<vmem>>, vector<4x1xf32>
      tpu.vector_store %arg4[%c0_11, %c0_12], %17 {strides = array<i32>} : memref<4x1xf32, #tpu.memory_space<vmem>>, vector<4x1xf32>,
    } else {
    }
    %c0 = arith.constant 0 : index
    %c0_3 = arith.constant 0 : index
    %c0_4 = arith.constant 0 : index
    %8 = vector.load %arg2[%c0, %c0_3, %c0_4] : memref<1x4x256xf32, #tpu.memory_space<vmem>>, vector<1x4x256xf32>
    %9 = vector.shape_cast %8 : vector<1x4x256xf32> to vector<4x256xf32>
    %c0_5 = arith.constant 0 : index
    %c0_6 = arith.constant 0 : index
    %10 = vector.load %arg4[%c0_5, %c0_6] : memref<4x1xf32, #tpu.memory_space<vmem>>, vector<4x1xf32>
    %cst = arith.constant dense<0.000000e+00> : vector<4xf32>
    %11 = vector.multi_reduction <add>, %9, %cst [1] : vector<4x256xf32> to vector<4xf32>
    %12 = vector.shape_cast %11 : vector<4xf32> to vector<4x1xf32>
    %13 = arith.addf %10, %12 : vector<4x1xf32>
    %c0_7 = arith.constant 0 : index
    %c0_8 = arith.constant 0 : index
    %14 = vector.load %arg4[%c0_7, %c0_8] : memref<4x1xf32, #tpu.memory_space<vmem>>, vector<4x1xf32>
    tpu.vector_store %arg4[%c0_7, %c0_8], %13 {strides = array<i32>} : memref<4x1xf32, #tpu.memory_space<vmem>>, vector<4x1xf32>,
    %15 = arith.extui %5 : i1 to i32
    %c0_i32_9 = arith.constant 0 : i32
    %16 = arith.cmpi ne, %15, %c0_i32_9 : i32
    scf.if %16 {
      %c0_10 = arith.constant 0 : index
      %c0_11 = arith.constant 0 : index
      %17 = vector.load %arg4[%c0_10, %c0_11] : memref<4x1xf32, #tpu.memory_space<vmem>>, vector<4x1xf32>
      %cst_12 = arith.constant 0.001953125 : f32
      %18 = vector.broadcast %cst_12 : f32 to vector<4x1xf32>
      %19 = arith.mulf %17, %18 : vector<4x1xf32>
      %cst_13 = arith.constant dense<0xFF800000> : vector<1xf32>
      %20 = vector.multi_reduction <maximumf>, %19, %cst_13 [0] : vector<4x1xf32> to vector<1xf32>
      %21 = vector.shape_cast %20 : vector<1xf32> to vector<1x1xf32>
      %22 = vector.broadcast %21 : vector<1x1xf32> to vector<4x1xf32>
      %23 = arith.subf %19, %22 : vector<4x1xf32>
      %24 = math.exp %23 : vector<4x1xf32>
      %cst_14 = arith.constant dense<0.000000e+00> : vector<1xf32>
      %25 = vector.multi_reduction <add>, %24, %cst_14 [0] : vector<4x1xf32> to vector<1xf32>
      %26 = vector.shape_cast %25 : vector<1xf32> to vector<1x1xf32>
      %27 = tpu.reciprocal %26 {approx = true} : vector<1x1xf32> -> vector<1x1xf32>
      %28 = arith.mulf %26, %27 : vector<1x1xf32>
      %cst_15 = arith.constant 2.000000e+00 : f32
      %29 = vector.broadcast %cst_15 : f32 to vector<1x1xf32>
      %30 = arith.subf %29, %28 : vector<1x1xf32>
      %31 = arith.mulf %27, %30 : vector<1x1xf32>
      %32 = vector.broadcast %31 : vector<1x1xf32> to vector<4x1xf32>
      %33 = arith.mulf %24, %32 : vector<4x1xf32>
      %34 = math.log %26 : vector<1x1xf32>
      %35 = vector.broadcast %34 : vector<1x1xf32> to vector<4x1xf32>
      %36 = arith.subf %23, %35 : vector<4x1xf32>
      %37 = arith.mulf %33, %36 : vector<4x1xf32>
      %38 = vector.shape_cast %37 : vector<4x1xf32> to vector<1x4x1xf32>
      %cst_16 = arith.constant dense<0.000000e+00> : vector<1xf32>
      %39 = vector.multi_reduction <add>, %38, %cst_16 [1, 2] : vector<1x4x1xf32> to vector<1xf32>
      %40 = vector.shape_cast %39 : vector<1xf32> to vector<1x1x1xf32>
      %41 = vector.extract %40[0, 0, 0] : f32 from vector<1x1x1xf32>
      %c0_17 = arith.constant 0 : index
      %c0_18 = arith.constant 0 : index
      %42 = memref.load %arg3[%c0_17, %c0_18] : memref<1x1xf32, #tpu.memory_space<smem>>
      memref.store %41, %arg3[%c0_17, %c0_18] : memref<1x1xf32, #tpu.memory_space<smem>>
    } else {
    }
    return
  }
  func.func @transform_0(%arg0: i32, %arg1: i32) -> (i32, i32, i32) {
    %c0_i32 = arith.constant 0 : i32
    %c0_i32_0 = arith.constant 0 : i32
    return %arg0, %c0_i32, %arg1 : i32, i32, i32
  }
  func.func @transform_1(%arg0: i32, %arg1: i32) -> (i32, i32) {
    %c0_i32 = arith.constant 0 : i32
    %c0_i32_0 = arith.constant 0 : i32
    %c0_i32_1 = arith.constant 0 : i32
    return %c0_i32, %c0_i32_0 : i32, i32
  }
}

</mosaic_0001>

<bundles_post_ra>
// kernel: tpu_custom_call.1
= control target key start
LH: loop header
LB: loop body
LE: loop exit
PB: predicated region body
PF: predicated region fallthrough
CT: control target
= control target key end

     0   :  { %6 = vsyncpa [#allocation4], 0  ;;  %s617_s0 = inlined_call_operand.hbm [shape: f32[2,4,256], index: 0, kind: input, shape index: {}]   ;;  %s618_s1 = inlined_call_operand.hbm [shape: f32[1,1], index: 1, kind: output, shape index: {}]  }
   0x1   :  { %8 = vsyncpa [#allocation4 + $0x1], 0 }
   0x2   :  { %9 = vsyncpa [#allocation5], 0  ;;  %s473_s6 = smov 0   ;;  %s475_s7 = smov 0  }
   0x3   :  { %s477_s8 = smov 0   ;;  %s479_s9 = smov 0  }
   0x4   :  { %s481_s10 = smov 0   ;;  %s483_s11 = smov 0  }
   0x5 LB: > { %s273_s12 = sadd.s32 4294967295, %s458_s11   ;;  %s27_s13 = sadd.s32 1, %s454_s10  ;;  %s458_s11 = sphi %s483_s11, %s15_s11   ;;  %s454_s10 = sphi %s481_s10, %s628_s10   ;;  %s450_s9 = sphi %s479_s9, %s627_s9   ;;  %s446_s8 = sphi %s477_s8, %s626_s8   ;;  %s442_s7 = sphi %s475_s7, %s625_s7   ;;  %s438_s6 = sphi %s473_s6, %s624_s6  }
   0x6   : > { %p29_p0 = scmp.ge.s32.totalorder %s27_s13, 2  ;;  %s36_s14 = sadd.s32 1, %s446_s8 }
   0x7   : > { %p43_p1 = scmp.ne.s32.totalorder %s446_s8, %s442_s7  ;;  %p44_p2 = scmp.eq.s32.totalorder %s458_s11, 0 }
   0x8   : > { %s630_s13 = smov (%p29_p0, %s27_s13), 0  ;;  %p49_p4 = scmp.ne.s32.totalorder %s442_s7, %s438_s6 }
   0x9   : > { %p509_p3 = por %p44_p2, %p43_p1  ;;  %s31_s16 = ssub.s32 %s454_s10, %s630_s13 }
   0xa   : > { %p50_p5 = scmp.eq.s32.totalorder %s273_s12, 0  ;;  %p34_p6 = scmp.eq.s32.totalorder %s31_s16, 0 }
   0xb   : > { %p302_p8 = scmp.lt.s32.totalorder %s458_s11, 2  ;;  %s94_s19 = sand.u32 1, %s446_s8  }
   0xc   : > { %p518_p7 = por %p50_p5, %p49_p4  ;;  %s287_s20 = sshll.u32 %s454_s10, 7 }
   0xd   : > { %s524_s18 = scalar_select %p34_p6, %s446_s8, %s36_s14  }
   0xe   : > { %s276_s21 = sshll.u32 %s94_s19, 3  ;;  %s531_s24 = scalar_lea.hbm %s617_s0, %s287_s20 }
   0xf   : > { %s98_s25 = scalar_lea.vmem [#allocation3], %s276_s21  ;;  %p535_p9 = pnand %p302_p8, %p509_p3 }
  0x10   : > { %s108_s26 = sshll.u32 %s98_s25, 4  ;;  %s95_s28 = scalar_lea.sflag [#allocation4], %s94_s19  ;;  %s539_s26 = int_to_ptr.vmem [resolvable:$true] %s108_s26 }
  0x11   : > { %s362_s29 = scalar_lea.hbm %s531_s24, 128  ;;  %p364_p13 = pneg %p535_p9 }
  0x12   : > { %p363_p12 = scmp.ne.s32.totalorder %s531_s24, %s362_s29  ;;  %s367_s3 = scalar_lea.hbm %s617_s0, 256 }
  0x13   : > { %p368_p2 = scmp.lt.u32.totalorder %s531_s24, %s617_s0  ;;  %p369_p3 = scmp.lt.u32.totalorder %s367_s3, %s362_s29 }
  0x14   : > { %p365_p0 = pnand %p364_p13, %p363_p12  ;;  %p371_p5 = scmp.lt.u32.totalorder %s362_s29, %s531_s24 }
  0x15   : > { %p370_p4 = por %p369_p3, %p368_p2 }
  0x16   : > { %p366_p1 = pneg %p365_p0 }
  0x17   : > { %p372_p6 = por %p371_p5, %p370_p4 }
  0x19   : > { %p373_p8 = pnand %p372_p6, %p366_p1 }
  0x1b   : > { %376 = shalt.err (!%p373_p8)
}
  0x1c   : > { %s377_s6 = scalar_lea.vmem %s539_s26, 128  ;;  %s460_s14 = smov [#allocation3]  }
  0x1d   : > { %p378_p12 = scmp.ne.s32.totalorder %s539_s26, %s377_s6  ;;  %s382_s15 = sshll.u32 %s460_s14, 4  ;;  %s383_s15 = int_to_ptr.vmem [resolvable:$false] %s382_s15 }
  0x1e   : > { %s384_s16 = scalar_lea.vmem %s383_s15, 256  ;;  %p385_p11 = scmp.lt.s32.totalorder %s539_s26, %s383_s15 }
  0x1f   : > { %p380_p0 = pnand %p378_p12, %p364_p13  ;;  %p386_p2 = scmp.lt.s32.totalorder %s384_s16, %s377_s6 }
  0x21   : > { %p381_p10 = pneg %p380_p0  ;;  %p387_p3 = por %p386_p2, %p385_p11 }
  0x23   : > { %p388_p4 = pnand %p387_p3, %p381_p10 }
  0x25   : > { %391 = shalt.err (!%p388_p4)
}
  0x26   : > { %301 = dma.hbm_to_vmem [thread:$0]  (!%p535_p9), %s531_s24, 128, %s539_s26, %s95_s28  }
  0x27   : > { %p622_p1 = scmp.lt.s32.totalorder %s458_s11, 3  ;;  %p623_p5 = scmp.ge.s32.totalorder %s458_s11, 1 }
  0x29   : > { %p114_p13 = pnand %p623_p5, %p622_p1 }
  0x2a   : > { %s119_s19 = sand.u32 (!%p114_p13), 1, %s442_s7  }
  0x2b   : > { %117 = sbr.rel (%p114_p13) target bundleno = 503 (0x1f7), region = 24  ;;  %s280_s20 = sshll.u32 (!%p114_p13), %s119_s19, 3 }
  0x2c   : > { %s120_s21 = scalar_lea.sflag (!%p114_p13), [#allocation4], %s119_s19  ;;  %s123_s22 = scalar_lea.vmem (!%p114_p13), [#allocation3], %s280_s20 }
  0x32   : > { %429 = dma.done.wait (%p518_p7), %s120_s21, 128  }
  0x33   : > { %431 = vsyncadd (%p518_p7), %s120_s21, 4294967168  ;;  %p138_p10 = scmp.eq.s32.totalorder %s450_s9, 0  ;;  %p142_p11 = scmp.eq.s32.totalorder %s450_s9, 1 }
  0x34   : > { %vm147_vm0 = vcmask (%p138_p10), 3072   ;;  %v461_v0 = vmov (%p138_p10), 0.0  }
  0x35   : > { %146 = sbr.rel (!%p138_p10) target bundleno = 60 (0x3c), region = 32  ;;  %148 = vst.msk [vmem:[#allocation2] sm:$0xf] (%p138_p10), %vm147_vm0, %v461_v0 }
  0x3c PF: > { %v149_v1 = vld [vmem:[%s123_s22] sm:$0xff]  ;;  %vm154_vm1 = vcmask 1043456   ;;  %v150_v6 = vld [vmem:[#allocation2] sm:$0xf]  ;;  %vm161_vm2 = vcmask 3072  }
  0x3d   : > { %v152_v2 = vcombine.high %v149_v1, %v149_v1  ;;  %v155_v3 = vsel %vm154_vm1, %v149_v1, 0.0 }
  0x3f   : > { %v156_v4 = vsel %vm154_vm1, %v152_v2, 0.0 }
  0x40   : > { %v157_v5 = vadd.f32 %v156_v4, %v155_v3 }
  0x42   : > { %158 = vadd.xlane.f32.xlu0 %v157_v5 }
  0xcc   : > { %164 = sbr.rel (!%p142_p11) target bundleno = 488 (0x1e8), region = 36 }
  0xcf   : > { %v159_v7 = vpop.xlane.xlu0 %158 }
  0xd0   : > { %v160_v8 = vadd.f32 %v159_v7, %v150_v6 }
  0xd2   : > { %162 = vst.msk [vmem:[#allocation2] sm:$0xf] %vm161_vm2, %v160_v8 }
  0xd9   : > { %v165_v9 = vld [vmem:[#allocation2] sm:$0xf] }
  0xda   : > { %v166_v10 = vmul.f32 0.001953125, %v165_v9 }
  0xdc   : > { %v167_v11 = vsel %vm161_vm2, %v166_v10, -inf }
  0xdd   : > { %v168_v12 = vrot.slane %v167_v11, 4 }
  0xdf   : > { %v169_v13 = vmax.f32 %v167_v11, %v168_v12 }
  0xe1   : > { %v170_v14 = vrot.slane %v169_v13, 2 }
  0xe3   : > { %v171_v15 = vmax.f32 %v169_v13, %v170_v14 }
  0xe5   : > { %v172_v16 = vrot.slane %v171_v15, 1 }
  0xe7   : > { %v173_v17 = vmax.f32 %v171_v15, %v172_v16 }
  0xe9   : > { %v174_v18 = vsub.f32 %v166_v10, %v173_v17 }
  0xeb   : > { %v175_v19 = vmul.f32 1.442695, %v174_v18 }
  0xed   : > { %356 = vpow2.f32 %v175_v19 }
  0xf7   : > { %v357_v20 = vpop.eup %356 }
  0xf8   : > { %v177_v21 = vsel %vm161_vm2, %v357_v20, 0.0 }
  0xf9   : > { %v178_v22 = vrot.slane %v177_v21, 4 }
  0xfb   : > { %v179_v23 = vadd.f32 %v178_v22, %v177_v21 }
  0xfd   : > { %v180_v24 = vrot.slane %v179_v23, 2 }
  0xff   : > { %v181_v25 = vadd.f32 %v180_v24, %v179_v23 }
 0x101   : > { %v182_v26 = vrot.slane %v181_v25, 1 }
 0x103   : > { %v183_v27 = vadd.f32 %v182_v26, %v181_v25 }
 0x105   : > { %358 = vrcp.f32 %v183_v27 }
 0x106   : > { %360 = vlog2.f32 %v183_v27 }
 0x10f   : > { %v359_v28 = vpop.eup %358 }
 0x110   : > { %v361_v29 = vpop.eup %360  ;;  %v185_v30 = vmul.f32 %v359_v28, %v183_v27 }
 0x111   : > { %v190_v31 = vmul.f32 0.6931472, %v361_v29 }
 0x112   : > { %v186_v32 = vsub.f32 2.0, %v185_v30 }
 0x113   : > { %v191_v34 = vsub.f32 %v174_v18, %v190_v31 }
 0x114   : > { %v187_v33 = vmul.f32 %v359_v28, %v186_v32 }
 0x116   : > { %v188_v35 = vmul.f32 %v357_v20, %v187_v33 }
 0x118   : > { %v192_v36 = vmul.f32 %v191_v34, %v188_v35 }
 0x11a   : > { %v193_v37 = vsel %vm161_vm2, %v192_v36, 0.0 }
 0x11b   : > { %194 = vadd.xlane.f32.xlu0 %v193_v37 }
 0x1a8   : > { %v195_v38 = vpop.xlane.xlu0 %194 }
 0x1a9   : > { %v196_v39 = vrot.slane %v195_v38, 4 }
 0x1ab   : > { %v197_v40 = vadd.f32 %v196_v39, %v195_v38 }
 0x1ad   : > { %v198_v41 = vrot.slane %v197_v40, 2 }
 0x1af   : > { %v199_v42 = vadd.f32 %v198_v41, %v197_v40 }
 0x1b1   : > { %v200_v43 = vrot.slane %v199_v42, 1 }
 0x1b3   : > { %v201_v44 = vadd.f32 %v200_v43, %v199_v42 }
 0x1b5   : > { %290 = vpush %v201_v44 }
 0x1e6   : > { %s291_s9 = spop %290 }
 0x1e7   : > { %204 = sst [smem:[#allocation6]] %s291_s9 }
 0x1e8 PF: > { %p303_p7 = scmp.eq.s32.totalorder %s273_s12, 1  ;;  %s392_s24 = scalar_lea.hbm %s618_s1, 16 }
 0x1e9   : > { %p393_p9 = scmp.ne.s32.totalorder %s618_s1, %s392_s24  ;;  %p398_p12 = scmp.lt.u32.totalorder %s392_s24, %s618_s1 }
 0x1eb   : > { %p394_p6 = pnand %p393_p9, %p303_p7 }
 0x1ed   : > { %p395_p8 = pneg %p394_p6 }
 0x1ef   : > { %p400_p0 = pnand %p398_p12, %p395_p8 }
 0x1f1   : > { %403 = shalt.err (!%p400_p0)
}
 0x1f2   : > { %s462_s29 = smov [#allocation6]  }
 0x1f3   : > { %295 = dma.smem_to_hbm (%p303_p7), %s462_s29, 16, %s618_s1, [#allocation5]  }
 0x1f4   : > { %433 = dma.done.wait (%p303_p7), [#allocation5], 16  }
 0x1f5   : > { %435 = vsyncadd (%p303_p7), [#allocation5], 4294967280 }
 0x1f6   : > { %218 = sfence }
 0x1f7 PF: > { %s15_s11 = sadd.s32 1, %s458_s11   ;;  %s624_s6 = smov %s442_s7 }
 0x1f8   : > { %p12_p2 = scmp.ge.s32.totalorder %s15_s11, 4   ;;  %s625_s7 = smov %s446_s8 }
 0x1f9   : > { %s626_s8 = smov %s524_s18  ;;  %s627_s9 = smov %s454_s10 }
 0x1fa   : > { %s628_s10 = smov %s630_s13  ;;  %14 = sbr.rel (!%p12_p2) target bundleno = 5 (0x5), region = 70 }
 0x201   :  { %224 = vsyncpa [#allocation4], 1 }
 0x202   :  { %226 = vsyncpa [#allocation4 + $0x1], 1 }
 0x203   :  { %227 = vsyncpa [#allocation5], 1 }
 0x204   :  { %229 = vsyncpa [#allocation5 + $0x1], 1 }

</bundles_post_ra>
